<compile_context>
chip_gen: v7x
topology: tpu7x:2x2x1
jax: 0.10.0
libtpu: 0.0.40
codegen_flags: <defaults>
</compile_context>

<pallas_src>
import functools

import jax
import jax.numpy as jnp
from jax.experimental import pallas as pl
from jax.experimental.pallas import tpu as pltpu

EPS = 1e-5  # nn.BatchNorm1d default eps
_VMEM = pl.BlockSpec(memory_space=pltpu.MemorySpace.VMEM)


@functools.lru_cache(maxsize=None)
def _roll_is_jnp_convention() -> bool:
    """Empirically determine pltpu.roll's rotation sign (robust across JAX versions).

    True  -> pltpu.roll(x, 1, axis) == jnp.roll(x, 1, axis)  (out[i] = x[i-1])
    False -> opposite convention                              (out[i] = x[i+1])
    """
    n = 128
    x = jnp.broadcast_to(jnp.arange(n, dtype=jnp.float32), (8, n))

    def k(x_ref, o_ref):
        o_ref[...] = pltpu.roll(x_ref[...], 1, axis=1)

    y = pl.pallas_call(
        k,
        out_shape=jax.ShapeDtypeStruct((8, n), jnp.float32),
        in_specs=[_VMEM],
        out_specs=_VMEM,
    )(x)
    return float(y[0, 1]) == 0.0


def _residual_kernel(x_ref, w1_ref, b1_ref, g1_ref, be1_ref,
                     w2_ref, b2_ref, g2_ref, be2_ref,
                     valid_ref, mprev_ref, mnext_ref,
                     out_ref, im_ref,
                     *, C, inv_count, shift_prev, shift_next):
    """Whole Residual forward on a lane-dense (C, NLP) slab resident in VMEM.

    im_ref: (3*C, NLP) VMEM scratch holding the im2col slab for the k=3 convs.
    """
    valid = valid_ref[...]    # (1, NLP): 1.0 on real (n, l) columns, 0.0 on lane padding
    m_prev = mprev_ref[...]   # valid AND l > 0      (left-neighbor tap exists)
    m_next = mnext_ref[...]   # valid AND l < L - 1  (right-neighbor tap exists)

    def conv_bn_relu(xa, w_ref, b_ref, g_ref, be_ref):
        # --- Conv1d(k=3, pad=1): build the (3C, NLP) im2col slab from rolled copies.
        # pltpu.roll runs on the XLU; masks realize the zero conv-padding and keep
        # adjacent samples in the flattened N*L axis from bleeding into each other.
        im_ref[0:C, :] = pltpu.roll(xa, shift_prev, axis=1) * m_prev          # x[:, l-1]
        im_ref[C:2 * C, :] = xa                                               # x[:, l]
        im_ref[2 * C:3 * C, :] = pltpu.roll(xa, shift_next, axis=1) * m_next  # x[:, l+1]
        # One MXU matmul covers all taps / channels / positions.
        y = jnp.dot(w_ref[...], im_ref[...],
                    preferred_element_type=jnp.float32) + b_ref[...]
        # --- BatchNorm1d (training): biased batch stats over (N, L) per channel,
        # single masked pass, folded into one scale/shift FMA.
        s1 = jnp.sum(y * valid, axis=1, keepdims=True) * inv_count        # E[y]
        s2 = jnp.sum(y * y * valid, axis=1, keepdims=True) * inv_count    # E[y^2]
        var = s2 - s1 * s1
        scale = g_ref[...] * jax.lax.rsqrt(var + EPS)                     # EUP rsqrt
        shift = be_ref[...] - s1 * scale
        # --- ReLU; re-zero lane-padding columns so they stay inert for the next conv.
        return jnp.maximum(y * scale + shift, 0.0) * valid

    x0 = x_ref[...]
    x1 = conv_bn_relu(x0, w1_ref, b1_ref, g1_ref, be1_ref)   # conv1 -> bn1 -> relu
    x2 = conv_bn_relu(x1, w2_ref, b2_ref, g2_ref, be2_ref)   # conv2 -> bn2 -> relu
    # use_1x1conv=False -> conv3 is None; label_=False -> y = x + x2; final ReLU.
    out_ref[...] = jnp.maximum(x0 + x2, 0.0)


def residual_forward(x, params):
    """x: (N, C, L) float32 -> (N, C, L) float32, one Pallas call."""
    N, C, L = x.shape
    NL = N * L
    NLP = max(128, ((NL + 127) // 128) * 128)   # lane-dense width (multiple of 128)

    jnp_conv = _roll_is_jnp_convention()
    shift_prev = 1 if jnp_conv else NLP - 1     # roll so that out[j] = x[j-1]
    shift_next = NLP - 1 if jnp_conv else 1     # roll so that out[j] = x[j+1]

    # (N, C, L) -> lane-dense (C, N*L), zero-padded to NLP columns.
    x2d = jnp.pad(jnp.transpose(x, (1, 0, 2)).reshape(C, NL), ((0, 0), (0, NLP - NL)))

    # Column masks (1, NLP).
    col = jnp.arange(NLP, dtype=jnp.int32)[None, :]
    pos = col % L
    in_range = col < NL
    valid = in_range.astype(jnp.float32)
    m_prev = (in_range & (pos > 0)).astype(jnp.float32)
    m_next = (in_range & (pos < L - 1)).astype(jnp.float32)

    # Conv weights flattened for im2col: w_flat[co, k*Cin + ci] = w[co, ci, k].
    w1f = jnp.transpose(params["w1"], (0, 2, 1)).reshape(C, 3 * C)
    w2f = jnp.transpose(params["w2"], (0, 2, 1)).reshape(C, 3 * C)

    kernel = functools.partial(
        _residual_kernel, C=C, inv_count=1.0 / float(NL),
        shift_prev=shift_prev, shift_next=shift_next)

    args = (x2d, w1f, params["b1"], params["g1"], params["beta1"],
            w2f, params["b2"], params["g2"], params["beta2"],
            valid, m_prev, m_next)
    out2d = pl.pallas_call(
        kernel,
        out_shape=jax.ShapeDtypeStruct((C, NLP), jnp.float32),
        in_specs=[_VMEM] * len(args),
        out_specs=_VMEM,
        scratch_shapes=[pltpu.VMEM((3 * C, NLP), jnp.float32)],
        # NOTE: for real sizes, add a grid over 512+-column lane tiles (halo handled by
        # the same roll+mask scheme), mark it "parallel" to use both v7x TensorCores,
        # and set vmem_limit_bytes against v7x's 64 MiB VMEM.
    )(*args)

    # Back to the PyTorch (N, C, L) layout.
    return jnp.transpose(out2d[:, :NL].reshape(C, N, L), (1, 0, 2))


def _reference_forward(x, params):
    """Pure-JAX (XLA) reference of the PyTorch Residual block (training-mode BN)."""
    def conv1d(x, w, b):
        L = x.shape[2]
        xp = jnp.pad(x, ((0, 0), (0, 0), (1, 1)))
        out = sum(jnp.einsum("oi,nil->nol", w[:, :, k], xp[:, :, k:k + L])
                  for k in range(3))
        return out + b[None, :, :]

    def bn_relu(y, g, be):
        mean = jnp.mean(y, axis=(0, 2), keepdims=True)
        var = jnp.mean((y - mean) ** 2, axis=(0, 2), keepdims=True)
        return jnp.maximum(g[None] * (y - mean) * jax.lax.rsqrt(var + EPS) + be[None], 0.0)

    x1 = bn_relu(conv1d(x, params["w1"], params["b1"]), params["g1"], params["beta1"])
    x2 = bn_relu(conv1d(x1, params["w2"], params["b2"]), params["g2"], params["beta2"])
    return jnp.maximum(x + x2, 0.0)


def init_params(key, c_in, c_out):
    """Deterministic synthetic parameters matching the PyTorch layer shapes."""
    k1, k2, k3, k4 = jax.random.split(key, 4)
    bound = 1.0 / jnp.sqrt(c_in * 3.0)  # nn.Conv1d default fan-in scale
    return {
        "w1": jax.random.uniform(k1, (c_out, c_in, 3), jnp.float32, -bound, bound),
        "b1": jax.random.uniform(k2, (c_out, 1), jnp.float32, -bound, bound),
        "w2": jax.random.uniform(k3, (c_out, c_out, 3), jnp.float32, -bound, bound),
        "b2": jax.random.uniform(k4, (c_out, 1), jnp.float32, -bound, bound),
        "g1": jnp.ones((c_out, 1), jnp.float32),
        "beta1": jnp.zeros((c_out, 1), jnp.float32),
        "g2": jnp.ones((c_out, 1), jnp.float32),
        "beta2": jnp.zeros((c_out, 1), jnp.float32),
    }


if __name__ == "__main__":
    key = jax.random.PRNGKey(0)
    kp, kx = jax.random.split(key)

    C, L = 3, 6                                           # matches x = torch.rand(3, 6)
    params = init_params(kp, C, C)                        # Residual(3, 3, label_=False)
    x = jax.random.uniform(kx, (1, C, L), jnp.float32)    # x.unsqueeze(0) -> (1, 3, 6)

    # net2 = net = Residual(...): the same module applied twice, then squeeze(0).
    out1 = residual_forward(x, params)
    out2 = residual_forward(out1, params)
    out = out2[0]
    jax.block_until_ready(out)

    ref = _reference_forward(_reference_forward(x, params), params)[0]
    assert out.shape == (C, L) and out.dtype == jnp.float32
    assert bool(jnp.allclose(out, ref, rtol=1e-3, atol=1e-3)), "mismatch vs JAX reference"
    print("KERNEL_OK")
</pallas_src>

<mosaic_0001>
module attributes {stable_mosaic.version = 11 : i64} {
  func.func @k(%arg0: memref<8x128xf32, #tpu.memory_space<vmem>>, %arg1: memref<8x128xf32, #tpu.memory_space<vmem>>) attributes {dimension_semantics = [], scalar_prefetch = 0 : i64, scratch_operands = 0 : i64, tpu.core_type = #tpu.core_type<tc>} {
    %c0 = arith.constant 0 : index
    %c0_0 = arith.constant 0 : index
    %0 = vector.load %arg0[%c0, %c0_0] : memref<8x128xf32, #tpu.memory_space<vmem>>, vector<8x128xf32>
    %c1_i32 = arith.constant 1 : i32
    %1 = tpu.dynamic_rotate %0 by %c1_i32 dim 1 : vector<8x128xf32>, i32 -> vector<8x128xf32>
    %c0_1 = arith.constant 0 : index
    %c0_2 = arith.constant 0 : index
    %2 = vector.load %arg1[%c0_1, %c0_2] : memref<8x128xf32, #tpu.memory_space<vmem>>, vector<8x128xf32>
    tpu.vector_store %arg1[%c0_1, %c0_2], %1 {strides = array<i32>} : memref<8x128xf32, #tpu.memory_space<vmem>>, vector<8x128xf32>,
    return
  }
}

</mosaic_0001>

<bundles_post_ra>
// kernel: tpu_custom_call.1
= control target key start
LH: loop header
LB: loop body
LE: loop exit
PB: predicated region body
PF: predicated region fallthrough
CT: control target
= control target key end

     0   :  { %6 = vsyncpa [#allocation3], 0  ;;  %s128_s0 = inlined_call_operand.hbm [shape: f32[8,128], index: 0, kind: input, shape index: {}]   ;;  %s129_s1 = inlined_call_operand.hbm [shape: f32[8,128], index: 1, kind: output, shape index: {}]  }
   0x1   :  { %7 = vsyncpa [#allocation4], 0  ;;  %s91_s6 = smov [#allocation2]   ;;  %s43_s10 = scalar_lea.hbm %s128_s0, 128 }
   0x2   :  { %s14_s7 = sshll.u32 %s91_s6, 4  ;;  %p44_p0 = scmp.ne.s32.totalorder %s128_s0, %s43_s10  ;;  %s15_s7 = int_to_ptr.vmem [resolvable:$true] %s14_s7 }
   0x3   :  { %p47_p1 = scmp.lt.u32.totalorder %s43_s10, %s128_s0 }
   0x5   :  { %p49_p2 = pnand %p47_p1, %p44_p0 }
   0x7   :  { %52 = shalt.err (!%p49_p2)
}
   0x8   :  { %s53_s15 = scalar_lea.vmem %s15_s7, 128  ;;  %p58_p4 = scmp.lt.s32.totalorder %s15_s7, %s15_s7 }
   0x9   :  { %p54_p3 = scmp.ne.s32.totalorder %s15_s7, %s53_s15  ;;  %p59_p5 = scmp.lt.s32.totalorder %s53_s15, %s53_s15 }
   0xb   :  { %p60_p6 = por %p59_p5, %p58_p4 }
   0xd   :  { %p61_p7 = pnand %p60_p6, %p54_p3 }
   0xf   :  { %64 = shalt.err (!%p61_p7)
}
  0x10   :  { %17 = dma.hbm_to_vmem [thread:$0]  %s128_s0, 128, %s15_s7, [#allocation3]  }
  0x11   :  { %87 = dma.done.wait [#allocation3], 128  }
  0x12   :  { %88 = vsyncadd [#allocation3], 4294967168  ;;  %v21_v0 = vld [vmem:[#allocation2] sm:$0xff]  ;;  %s92_s18 = smov 1   ;;  %s93_s19 = smov [#allocation5]  }
  0x13   :  { %22 = vrot.lane.b32.xlu0 %v21_v0, %s92_s18  ;;  %s31_s20 = sshll.u32 %s93_s19, 4  ;;  %s32_s20 = int_to_ptr.vmem [resolvable:$true] %s31_s20 }
  0x14   :  { %s65_s21 = scalar_lea.vmem %s32_s20, 128  ;;  %p70_p9 = scmp.lt.s32.totalorder %s32_s20, %s32_s20 }
  0x15   :  { %p66_p8 = scmp.ne.s32.totalorder %s32_s20, %s65_s21  ;;  %p71_p10 = scmp.lt.s32.totalorder %s65_s21, %s65_s21 }
  0x17   :  { %p72_p11 = por %p71_p10, %p70_p9 }
  0x19   :  { %p73_p12 = pnand %p72_p11, %p66_p8 }
  0x85   :  { %v23_v1 = vpop.permute.xlu0 %22 }
  0x86   :  { %24 = vst [vmem:[#allocation5] sm:$0xff] %v23_v1 }
  0x87   :  { %76 = shalt.err (!%p73_p12)
}
  0x88   :  { %s77_s0 = scalar_lea.hbm %s129_s1, 128 }
  0x89   :  { %p78_p13 = scmp.ne.s32.totalorder %s129_s1, %s77_s0  ;;  %p81_p0 = scmp.lt.u32.totalorder %s77_s0, %s129_s1 }
  0x8b   :  { %p83_p1 = pnand %p81_p0, %p78_p13 }
  0x8d   :  { %86 = shalt.err (!%p83_p1)
}
  0x8e   :  { %34 = dma.vmem_to_hbm [thread:$0]  %s32_s20, 128, %s129_s1, [#allocation4]  }
  0x8f   :  { %89 = dma.done.wait [#allocation4], 128  }
  0x90   :  { %90 = vsyncadd [#allocation4], 4294967168 }
  0x91   :  { %38 = vsyncpa [#allocation3], 1 }
  0x92   :  { %39 = vsyncpa [#allocation4], 1 }

</bundles_post_ra>
